<compile_context>
chip_gen: v7x
topology: tpu7x:2x2x1
jax: 0.10.0
libtpu: 0.0.40
codegen_flags: <defaults>
</compile_context>

<pallas_src>
import functools

import jax
import jax.numpy as jnp
from jax.experimental import pallas as pl
from jax.experimental.pallas import tpu as pltpu

_LANES = 128
_MAX_TILE_ROWS = 1024          # ~0.5 MiB per f32 buffer -> ~85% HBM roofline
_N_HASHES = 6                  # 6 hashes -> 12 uniforms -> Irwin-Hall N(0,1)
_GOLDEN = 0x9E3779B9


def _hash_u32(x):
    """lowbias32 integer finalizer (murmur-style avalanche), uint32 -> uint32."""
    x = x ^ (x >> 16)
    x = x * jnp.uint32(0x7FEB352D)
    x = x ^ (x >> 15)
    x = x * jnp.uint32(0x846CA68B)
    x = x ^ (x >> 16)
    return x


def _gaussian_dropout_kernel(seed_ref, x_ref, o_ref, *, std):
    tile_r, lanes = x_ref.shape

    # Global element index of every slot in this tile (grid-invariant key).
    row0 = pl.program_id(0) * tile_r
    row_iota = jax.lax.broadcasted_iota(jnp.int32, (tile_r, lanes), 0)
    lane_iota = jax.lax.broadcasted_iota(jnp.int32, (tile_r, lanes), 1)
    idx = ((row0 + row_iota) * lanes + lane_iota).astype(jnp.uint32)

    key = (seed_ref[0].astype(jnp.uint32) * jnp.uint32(_GOLDEN)) ^ jnp.uint32(0x85EBCA6B)

    # Sum of 12 uniforms in [0,1) (two 16-bit uniforms per 32-bit hash):
    # mean 6, variance 1  ->  g = sum - 6  ~  N(0, 1)  (Irwin-Hall approx).
    acc = jnp.zeros((tile_r, lanes), jnp.float32)
    inv16 = jnp.float32(1.0 / 65536.0)
    for j in range(_N_HASHES):
        kj = key + jnp.uint32(((j + 1) * _GOLDEN) & 0xFFFFFFFF)
        h = _hash_u32(idx ^ kj)
        lo = (h & jnp.uint32(0xFFFF)).astype(jnp.int32).astype(jnp.float32)
        hi = (h >> 16).astype(jnp.int32).astype(jnp.float32)
        acc = acc + (lo + hi) * inv16
    g = acc - jnp.float32(6.0)                       # ~ N(0, 1)
    d = jnp.float32(1.0) + jnp.float32(std) * g      # ~ N(1, std^2)

    xv = x_ref[...]
    o_ref[...] = xv * d.astype(xv.dtype)             # multiply in input dtype


def dropout_base_forward(x, *, std, seed, training=True):
    """Forward pass of DropoutBase: multiplicative Gaussian noise in Pallas."""
    if (not training) or std == 0:
        return x

    orig_shape = x.shape
    orig_dtype = x.dtype
    n = x.size

    # Lane-dense 2-D view.  Fast path: no host pad/slice when n % 128 == 0.
    ragged = (n % _LANES) != 0
    if ragged:
        # TODO(synk): ragged tail could be handled with an in-kernel masked
        # store instead of a (small) host-side pad of the final partial row.
        rows = pl.cdiv(n, _LANES)
        pad = rows * _LANES - n
        flat = jnp.concatenate([x.reshape(-1), jnp.zeros((pad,), orig_dtype)])
        x2 = flat.reshape(rows, _LANES)
    else:
        rows = n // _LANES
        x2 = x.reshape(rows, _LANES)

    # Row tiling: big enough to hit HBM roofline, small enough for v7x VMEM.
    tile_r = _MAX_TILE_ROWS
    if rows < tile_r:
        tile_r = max(8, ((rows + 7) // 8) * 8)
    grid = (pl.cdiv(rows, tile_r),)

    seed_arr = jnp.asarray([seed], dtype=jnp.int32)
    kernel = functools.partial(_gaussian_dropout_kernel, std=float(std))

    out2 = pl.pallas_call(
        kernel,
        out_shape=jax.ShapeDtypeStruct((rows, _LANES), orig_dtype),
        grid_spec=pltpu.PrefetchScalarGridSpec(
            num_scalar_prefetch=1,
            grid=grid,
            in_specs=[pl.BlockSpec((tile_r, _LANES), lambda i, _s: (i, 0))],
            out_specs=pl.BlockSpec((tile_r, _LANES), lambda i, _s: (i, 0)),
        ),
        compiler_params=pltpu.CompilerParams(
            dimension_semantics=("parallel",),   # megacore sharding on v7x
        ),
    )(seed_arr, x2)

    if ragged:
        return out2.reshape(-1)[:n].reshape(orig_shape)
    return out2.reshape(orig_shape)


if __name__ == "__main__":
    key = jax.random.PRNGKey(0)
    # Small NCHW input consistent with a conv-style dropout module.
    x = jax.random.normal(key, (2, 4, 16, 16), dtype=jnp.float32)
    std = 0.5

    # Training mode: multiplicative Gaussian noise applied in-kernel.
    y_train = dropout_base_forward(x, std=std, seed=1234, training=True)
    jax.block_until_ready(y_train)

    # Eval mode (or std == 0): identity.
    y_eval = dropout_base_forward(x, std=std, seed=1234, training=False)
    jax.block_until_ready(y_eval)

    assert y_train.shape == x.shape and y_train.dtype == x.dtype
    assert bool(jnp.all(y_eval == x))
    # Sanity: noise has mean ~1, so output magnitude stays in the same ballpark.
    ratio = jnp.mean(jnp.abs(y_train)) / jnp.mean(jnp.abs(x))
    assert 0.5 < float(ratio) < 2.0
    # Noise should actually perturb the input in training mode.
    assert not bool(jnp.all(y_train == x))

    print("KERNEL_OK")
</pallas_src>

<mosaic_0001>
module attributes {stable_mosaic.version = 11 : i64} {
  func.func @_gaussian_dropout_kernel(%arg0: i32, %arg1: memref<1xi32, #tpu.memory_space<smem>>, %arg2: memref<16x128xf32, #tpu.memory_space<vmem>>, %arg3: memref<16x128xf32, #tpu.memory_space<vmem>>) attributes {dimension_semantics = [#tpu.dimension_semantics<parallel>], iteration_bounds = array<i64: 1>, scalar_prefetch = 1 : i64, scratch_operands = 0 : i64, tpu.core_type = #tpu.core_type<tc>, window_params = [{transform_indices = @transform_0, window_bounds = array<i64: 16, 128>}, {transform_indices = @transform_1, window_bounds = array<i64: 16, 128>}]} {
    %c16_i32 = arith.constant 16 : i32
    %0 = arith.muli %arg0, %c16_i32 : i32
    %1 = tpu.iota {dimensions = array<i32: 0>} : vector<16x128xi32>
    %2 = tpu.iota {dimensions = array<i32: 1>} : vector<16x128xi32>
    %3 = vector.broadcast %0 : i32 to vector<16x128xi32>
    %4 = arith.addi %3, %1 : vector<16x128xi32>
    %c128_i32 = arith.constant 128 : i32
    %5 = vector.broadcast %c128_i32 : i32 to vector<16x128xi32>
    %6 = arith.muli %4, %5 : vector<16x128xi32>
    %7 = arith.addi %6, %2 : vector<16x128xi32>
    %c0 = arith.constant 0 : index
    %8 = memref.load %arg1[%c0] : memref<1xi32, #tpu.memory_space<smem>>
    %c-1640531527_i32 = arith.constant -1640531527 : i32
    %9 = arith.muli %8, %c-1640531527_i32 : i32
    %c-2048144789_i32 = arith.constant -2048144789 : i32
    %10 = arith.xori %9, %c-2048144789_i32 : i32
    %cst = arith.constant 0.000000e+00 : f32
    %11 = vector.broadcast %cst : f32 to vector<16x128xf32>
    %c-1640531527_i32_0 = arith.constant -1640531527 : i32
    %12 = arith.addi %10, %c-1640531527_i32_0 : i32
    %13 = vector.broadcast %12 : i32 to vector<16x128xi32>
    %14 = arith.xori %7, %13 : vector<16x128xi32>
    %c16_i32_1 = arith.constant 16 : i32
    %15 = vector.broadcast %c16_i32_1 : i32 to vector<16x128xi32>
    %16 = arith.shrui %14, %15 : vector<16x128xi32>
    %17 = arith.xori %14, %16 : vector<16x128xi32>
    %c2146121005_i32 = arith.constant 2146121005 : i32
    %18 = vector.broadcast %c2146121005_i32 : i32 to vector<16x128xi32>
    %19 = arith.muli %17, %18 : vector<16x128xi32>
    %c15_i32 = arith.constant 15 : i32
    %20 = vector.broadcast %c15_i32 : i32 to vector<16x128xi32>
    %21 = arith.shrui %19, %20 : vector<16x128xi32>
    %22 = arith.xori %19, %21 : vector<16x128xi32>
    %c-2073254261_i32 = arith.constant -2073254261 : i32
    %23 = vector.broadcast %c-2073254261_i32 : i32 to vector<16x128xi32>
    %24 = arith.muli %22, %23 : vector<16x128xi32>
    %c16_i32_2 = arith.constant 16 : i32
    %25 = vector.broadcast %c16_i32_2 : i32 to vector<16x128xi32>
    %26 = arith.shrui %24, %25 : vector<16x128xi32>
    %27 = arith.xori %24, %26 : vector<16x128xi32>
    %c65535_i32 = arith.constant 65535 : i32
    %28 = vector.broadcast %c65535_i32 : i32 to vector<16x128xi32>
    %29 = arith.andi %27, %28 : vector<16x128xi32>
    %30 = arith.sitofp %29 : vector<16x128xi32> to vector<16x128xf32>
    %c16_i32_3 = arith.constant 16 : i32
    %31 = vector.broadcast %c16_i32_3 : i32 to vector<16x128xi32>
    %32 = arith.shrui %27, %31 : vector<16x128xi32>
    %33 = arith.sitofp %32 : vector<16x128xi32> to vector<16x128xf32>
    %34 = arith.addf %30, %33 : vector<16x128xf32>
    %cst_4 = arith.constant 1.52587891E-5 : f32
    %35 = vector.broadcast %cst_4 : f32 to vector<16x128xf32>
    %36 = arith.mulf %34, %35 : vector<16x128xf32>
    %37 = arith.addf %11, %36 : vector<16x128xf32>
    %c1013904242_i32 = arith.constant 1013904242 : i32
    %38 = arith.addi %10, %c1013904242_i32 : i32
    %39 = vector.broadcast %38 : i32 to vector<16x128xi32>
    %40 = arith.xori %7, %39 : vector<16x128xi32>
    %c16_i32_5 = arith.constant 16 : i32
    %41 = vector.broadcast %c16_i32_5 : i32 to vector<16x128xi32>
    %42 = arith.shrui %40, %41 : vector<16x128xi32>
    %43 = arith.xori %40, %42 : vector<16x128xi32>
    %c2146121005_i32_6 = arith.constant 2146121005 : i32
    %44 = vector.broadcast %c2146121005_i32_6 : i32 to vector<16x128xi32>
    %45 = arith.muli %43, %44 : vector<16x128xi32>
    %c15_i32_7 = arith.constant 15 : i32
    %46 = vector.broadcast %c15_i32_7 : i32 to vector<16x128xi32>
    %47 = arith.shrui %45, %46 : vector<16x128xi32>
    %48 = arith.xori %45, %47 : vector<16x128xi32>
    %c-2073254261_i32_8 = arith.constant -2073254261 : i32
    %49 = vector.broadcast %c-2073254261_i32_8 : i32 to vector<16x128xi32>
    %50 = arith.muli %48, %49 : vector<16x128xi32>
    %c16_i32_9 = arith.constant 16 : i32
    %51 = vector.broadcast %c16_i32_9 : i32 to vector<16x128xi32>
    %52 = arith.shrui %50, %51 : vector<16x128xi32>
    %53 = arith.xori %50, %52 : vector<16x128xi32>
    %c65535_i32_10 = arith.constant 65535 : i32
    %54 = vector.broadcast %c65535_i32_10 : i32 to vector<16x128xi32>
    %55 = arith.andi %53, %54 : vector<16x128xi32>
    %56 = arith.sitofp %55 : vector<16x128xi32> to vector<16x128xf32>
    %c16_i32_11 = arith.constant 16 : i32
    %57 = vector.broadcast %c16_i32_11 : i32 to vector<16x128xi32>
    %58 = arith.shrui %53, %57 : vector<16x128xi32>
    %59 = arith.sitofp %58 : vector<16x128xi32> to vector<16x128xf32>
    %60 = arith.addf %56, %59 : vector<16x128xf32>
    %cst_12 = arith.constant 1.52587891E-5 : f32
    %61 = vector.broadcast %cst_12 : f32 to vector<16x128xf32>
    %62 = arith.mulf %60, %61 : vector<16x128xf32>
    %63 = arith.addf %37, %62 : vector<16x128xf32>
    %c-626627285_i32 = arith.constant -626627285 : i32
    %64 = arith.addi %10, %c-626627285_i32 : i32
    %65 = vector.broadcast %64 : i32 to vector<16x128xi32>
    %66 = arith.xori %7, %65 : vector<16x128xi32>
    %c16_i32_13 = arith.constant 16 : i32
    %67 = vector.broadcast %c16_i32_13 : i32 to vector<16x128xi32>
    %68 = arith.shrui %66, %67 : vector<16x128xi32>
    %69 = arith.xori %66, %68 : vector<16x128xi32>
    %c2146121005_i32_14 = arith.constant 2146121005 : i32
    %70 = vector.broadcast %c2146121005_i32_14 : i32 to vector<16x128xi32>
    %71 = arith.muli %69, %70 : vector<16x128xi32>
    %c15_i32_15 = arith.constant 15 : i32
    %72 = vector.broadcast %c15_i32_15 : i32 to vector<16x128xi32>
    %73 = arith.shrui %71, %72 : vector<16x128xi32>
    %74 = arith.xori %71, %73 : vector<16x128xi32>
    %c-2073254261_i32_16 = arith.constant -2073254261 : i32
    %75 = vector.broadcast %c-2073254261_i32_16 : i32 to vector<16x128xi32>
    %76 = arith.muli %74, %75 : vector<16x128xi32>
    %c16_i32_17 = arith.constant 16 : i32
    %77 = vector.broadcast %c16_i32_17 : i32 to vector<16x128xi32>
    %78 = arith.shrui %76, %77 : vector<16x128xi32>
    %79 = arith.xori %76, %78 : vector<16x128xi32>
    %c65535_i32_18 = arith.constant 65535 : i32
    %80 = vector.broadcast %c65535_i32_18 : i32 to vector<16x128xi32>
    %81 = arith.andi %79, %80 : vector<16x128xi32>
    %82 = arith.sitofp %81 : vector<16x128xi32> to vector<16x128xf32>
    %c16_i32_19 = arith.constant 16 : i32
    %83 = vector.broadcast %c16_i32_19 : i32 to vector<16x128xi32>
    %84 = arith.shrui %79, %83 : vector<16x128xi32>
    %85 = arith.sitofp %84 : vector<16x128xi32> to vector<16x128xf32>
    %86 = arith.addf %82, %85 : vector<16x128xf32>
    %cst_20 = arith.constant 1.52587891E-5 : f32
    %87 = vector.broadcast %cst_20 : f32 to vector<16x128xf32>
    %88 = arith.mulf %86, %87 : vector<16x128xf32>
    %89 = arith.addf %63, %88 : vector<16x128xf32>
    %c2027808484_i32 = arith.constant 2027808484 : i32
    %90 = arith.addi %10, %c2027808484_i32 : i32
    %91 = vector.broadcast %90 : i32 to vector<16x128xi32>
    %92 = arith.xori %7, %91 : vector<16x128xi32>
    %c16_i32_21 = arith.constant 16 : i32
    %93 = vector.broadcast %c16_i32_21 : i32 to vector<16x128xi32>
    %94 = arith.shrui %92, %93 : vector<16x128xi32>
    %95 = arith.xori %92, %94 : vector<16x128xi32>
    %c2146121005_i32_22 = arith.constant 2146121005 : i32
    %96 = vector.broadcast %c2146121005_i32_22 : i32 to vector<16x128xi32>
    %97 = arith.muli %95, %96 : vector<16x128xi32>
    %c15_i32_23 = arith.constant 15 : i32
    %98 = vector.broadcast %c15_i32_23 : i32 to vector<16x128xi32>
    %99 = arith.shrui %97, %98 : vector<16x128xi32>
    %100 = arith.xori %97, %99 : vector<16x128xi32>
    %c-2073254261_i32_24 = arith.constant -2073254261 : i32
    %101 = vector.broadcast %c-2073254261_i32_24 : i32 to vector<16x128xi32>
    %102 = arith.muli %100, %101 : vector<16x128xi32>
    %c16_i32_25 = arith.constant 16 : i32
    %103 = vector.broadcast %c16_i32_25 : i32 to vector<16x128xi32>
    %104 = arith.shrui %102, %103 : vector<16x128xi32>
    %105 = arith.xori %102, %104 : vector<16x128xi32>
    %c65535_i32_26 = arith.constant 65535 : i32
    %106 = vector.broadcast %c65535_i32_26 : i32 to vector<16x128xi32>
    %107 = arith.andi %105, %106 : vector<16x128xi32>
    %108 = arith.sitofp %107 : vector<16x128xi32> to vector<16x128xf32>
    %c16_i32_27 = arith.constant 16 : i32
    %109 = vector.broadcast %c16_i32_27 : i32 to vector<16x128xi32>
    %110 = arith.shrui %105, %109 : vector<16x128xi32>
    %111 = arith.sitofp %110 : vector<16x128xi32> to vector<16x128xf32>
    %112 = arith.addf %108, %111 : vector<16x128xf32>
    %cst_28 = arith.constant 1.52587891E-5 : f32
    %113 = vector.broadcast %cst_28 : f32 to vector<16x128xf32>
    %114 = arith.mulf %112, %113 : vector<16x128xf32>
    %115 = arith.addf %89, %114 : vector<16x128xf32>
    %c387276957_i32 = arith.constant 387276957 : i32
    %116 = arith.addi %10, %c387276957_i32 : i32
    %117 = vector.broadcast %116 : i32 to vector<16x128xi32>
    %118 = arith.xori %7, %117 : vector<16x128xi32>
    %c16_i32_29 = arith.constant 16 : i32
    %119 = vector.broadcast %c16_i32_29 : i32 to vector<16x128xi32>
    %120 = arith.shrui %118, %119 : vector<16x128xi32>
    %121 = arith.xori %118, %120 : vector<16x128xi32>
    %c2146121005_i32_30 = arith.constant 2146121005 : i32
    %122 = vector.broadcast %c2146121005_i32_30 : i32 to vector<16x128xi32>
    %123 = arith.muli %121, %122 : vector<16x128xi32>
    %c15_i32_31 = arith.constant 15 : i32
    %124 = vector.broadcast %c15_i32_31 : i32 to vector<16x128xi32>
    %125 = arith.shrui %123, %124 : vector<16x128xi32>
    %126 = arith.xori %123, %125 : vector<16x128xi32>
    %c-2073254261_i32_32 = arith.constant -2073254261 : i32
    %127 = vector.broadcast %c-2073254261_i32_32 : i32 to vector<16x128xi32>
    %128 = arith.muli %126, %127 : vector<16x128xi32>
    %c16_i32_33 = arith.constant 16 : i32
    %129 = vector.broadcast %c16_i32_33 : i32 to vector<16x128xi32>
    %130 = arith.shrui %128, %129 : vector<16x128xi32>
    %131 = arith.xori %128, %130 : vector<16x128xi32>
    %c65535_i32_34 = arith.constant 65535 : i32
    %132 = vector.broadcast %c65535_i32_34 : i32 to vector<16x128xi32>
    %133 = arith.andi %131, %132 : vector<16x128xi32>
    %134 = arith.sitofp %133 : vector<16x128xi32> to vector<16x128xf32>
    %c16_i32_35 = arith.constant 16 : i32
    %135 = vector.broadcast %c16_i32_35 : i32 to vector<16x128xi32>
    %136 = arith.shrui %131, %135 : vector<16x128xi32>
    %137 = arith.sitofp %136 : vector<16x128xi32> to vector<16x128xf32>
    %138 = arith.addf %134, %137 : vector<16x128xf32>
    %cst_36 = arith.constant 1.52587891E-5 : f32
    %139 = vector.broadcast %cst_36 : f32 to vector<16x128xf32>
    %140 = arith.mulf %138, %139 : vector<16x128xf32>
    %141 = arith.addf %115, %140 : vector<16x128xf32>
    %c-1253254570_i32 = arith.constant -1253254570 : i32
    %142 = arith.addi %10, %c-1253254570_i32 : i32
    %143 = vector.broadcast %142 : i32 to vector<16x128xi32>
    %144 = arith.xori %7, %143 : vector<16x128xi32>
    %c16_i32_37 = arith.constant 16 : i32
    %145 = vector.broadcast %c16_i32_37 : i32 to vector<16x128xi32>
    %146 = arith.shrui %144, %145 : vector<16x128xi32>
    %147 = arith.xori %144, %146 : vector<16x128xi32>
    %c2146121005_i32_38 = arith.constant 2146121005 : i32
    %148 = vector.broadcast %c2146121005_i32_38 : i32 to vector<16x128xi32>
    %149 = arith.muli %147, %148 : vector<16x128xi32>
    %c15_i32_39 = arith.constant 15 : i32
    %150 = vector.broadcast %c15_i32_39 : i32 to vector<16x128xi32>
    %151 = arith.shrui %149, %150 : vector<16x128xi32>
    %152 = arith.xori %149, %151 : vector<16x128xi32>
    %c-2073254261_i32_40 = arith.constant -2073254261 : i32
    %153 = vector.broadcast %c-2073254261_i32_40 : i32 to vector<16x128xi32>
    %154 = arith.muli %152, %153 : vector<16x128xi32>
    %c16_i32_41 = arith.constant 16 : i32
    %155 = vector.broadcast %c16_i32_41 : i32 to vector<16x128xi32>
    %156 = arith.shrui %154, %155 : vector<16x128xi32>
    %157 = arith.xori %154, %156 : vector<16x128xi32>
    %c65535_i32_42 = arith.constant 65535 : i32
    %158 = vector.broadcast %c65535_i32_42 : i32 to vector<16x128xi32>
    %159 = arith.andi %157, %158 : vector<16x128xi32>
    %160 = arith.sitofp %159 : vector<16x128xi32> to vector<16x128xf32>
    %c16_i32_43 = arith.constant 16 : i32
    %161 = vector.broadcast %c16_i32_43 : i32 to vector<16x128xi32>
    %162 = arith.shrui %157, %161 : vector<16x128xi32>
    %163 = arith.sitofp %162 : vector<16x128xi32> to vector<16x128xf32>
    %164 = arith.addf %160, %163 : vector<16x128xf32>
    %cst_44 = arith.constant 1.52587891E-5 : f32
    %165 = vector.broadcast %cst_44 : f32 to vector<16x128xf32>
    %166 = arith.mulf %164, %165 : vector<16x128xf32>
    %167 = arith.addf %141, %166 : vector<16x128xf32>
    %cst_45 = arith.constant 6.000000e+00 : f32
    %168 = vector.broadcast %cst_45 : f32 to vector<16x128xf32>
    %169 = arith.subf %167, %168 : vector<16x128xf32>
    %cst_46 = arith.constant 5.000000e-01 : f32
    %170 = vector.broadcast %cst_46 : f32 to vector<16x128xf32>
    %171 = arith.mulf %170, %169 : vector<16x128xf32>
    %cst_47 = arith.constant 1.000000e+00 : f32
    %172 = vector.broadcast %cst_47 : f32 to vector<16x128xf32>
    %173 = arith.addf %172, %171 : vector<16x128xf32>
    %c0_48 = arith.constant 0 : index
    %c0_49 = arith.constant 0 : index
    %174 = vector.load %arg2[%c0_48, %c0_49] : memref<16x128xf32, #tpu.memory_space<vmem>>, vector<16x128xf32>
    %175 = arith.mulf %174, %173 : vector<16x128xf32>
    %c0_50 = arith.constant 0 : index
    %c0_51 = arith.constant 0 : index
    %176 = vector.load %arg3[%c0_50, %c0_51] : memref<16x128xf32, #tpu.memory_space<vmem>>, vector<16x128xf32>
    tpu.vector_store %arg3[%c0_50, %c0_51], %175 {strides = array<i32>} : memref<16x128xf32, #tpu.memory_space<vmem>>, vector<16x128xf32>,
    return
  }
  func.func @transform_0(%arg0: i32, %arg1: memref<1xi32, #tpu.memory_space<smem>>) -> (i32, i32) {
    %c0_i32 = arith.constant 0 : i32
    %c0_i32_0 = arith.constant 0 : i32
    return %arg0, %c0_i32 : i32, i32
  }
  func.func @transform_1(%arg0: i32, %arg1: memref<1xi32, #tpu.memory_space<smem>>) -> (i32, i32) {
    %c0_i32 = arith.constant 0 : i32
    %c0_i32_0 = arith.constant 0 : i32
    return %arg0, %c0_i32 : i32, i32
  }
}

</mosaic_0001>

<bundles_post_ra>
// kernel: tpu_custom_call.1
= control target key start
LH: loop header
LB: loop body
LE: loop exit
PB: predicated region body
PF: predicated region fallthrough
CT: control target
= control target key end

     0   :  { %8 = vsyncpa [#allocation5], 0  ;;  %s404_s0 = inlined_call_operand.<no memory space> [shape: s32[1], index: 0, kind: input, shape index: {}]   ;;  %s405_s1 = inlined_call_operand.hbm [shape: f32[16,128], index: 1, kind: input, shape index: {}]   ;;  %s406_s2 = inlined_call_operand.hbm [shape: f32[16,128], index: 2, kind: output, shape index: {}]  }
   0x1   :  { %9 = vsyncpa [#allocation6], 0  ;;  %s328_s9 = smov [#allocation4]   ;;  %s280_s13 = scalar_lea.hbm %s405_s1, 256 }
   0x2   :  { %s15_s10 = sshll.u32 %s328_s9, 4  ;;  %p281_p0 = scmp.ne.s32.totalorder %s405_s1, %s280_s13  ;;  %s16_s10 = int_to_ptr.vmem [resolvable:$true] %s15_s10 }
   0x3   :  { %p284_p1 = scmp.lt.u32.totalorder %s280_s13, %s405_s1 }
   0x5   :  { %p286_p2 = pnand %p284_p1, %p281_p0 }
   0x7   :  { %289 = shalt.err (!%p286_p2)
}
   0x8   :  { %s290_s18 = scalar_lea.vmem %s16_s10, 256  ;;  %p295_p4 = scmp.lt.s32.totalorder %s16_s10, %s16_s10 }
   0x9   :  { %p291_p3 = scmp.ne.s32.totalorder %s16_s10, %s290_s18  ;;  %p296_p5 = scmp.lt.s32.totalorder %s290_s18, %s290_s18 }
   0xb   :  { %p297_p6 = por %p296_p5, %p295_p4 }
   0xd   :  { %p298_p7 = pnand %p297_p6, %p291_p3 }
   0xf   :  { %301 = shalt.err (!%p298_p7)
}
  0x10   :  { %s329_s19 = smov 128   ;;  %s330_s20 = smov 8  }
  0x11   :  { %21 = dma.hbm_to_vmem [thread:$0]  %s405_s1, 256, %s16_s10, [#allocation5], %s329_s19, %s329_s19, %s330_s20  }
  0x12   :  { %324 = dma.done.wait [#allocation5], 256  }
  0x13   :  { %325 = vsyncadd [#allocation5], 4294967040  ;;  %v26_v0 = vlaneseq  ;;  %s39_s25 = smul.u32 2654435769, %s404_s0  ;;  %s331_s0 = smov [#allocation7]  }
  0x14   :  { %s262_s4 = sshll.u32 %s331_s0, 4  ;;  %s263_s4 = int_to_ptr.vmem [resolvable:$true] %s262_s4 }
  0x15   :  { %v27_v1 = vshrl.u32 %v26_v0, 7  ;;  %v30_v2 = vand.u32 127, %v26_v0  ;;  %s40_s26 = sxor.u32 2246822507, %s39_s25  ;;  %s302_s5 = scalar_lea.vmem %s263_s4, 256 }
  0x16   :  { %s41_s27 = sadd.s32 2654435769, %s40_s26  ;;  %s75_s28 = sadd.s32 1013904242, %s40_s26 }
  0x17   :  { %v34_v3 = vmul.u32 128, %v27_v1  ;;  %s109_s29 = sadd.s32 3668340011, %s40_s26  ;;  %s143_s30 = sadd.s32 2027808484, %s40_s26  ;;  %v28_v4 = vadd.s32 8, %v27_v1  ;;  %v42_v5 = vstv %s41_s27  ;;  %v76_v6 = vstv %s75_s28 }
  0x18   :  { %v365_v7 = vstv %s109_s29  ;;  %v367_v8 = vstv %s143_s30  ;;  %s177_s1 = sadd.s32 387276957, %s40_s26  ;;  %s211_s3 = sadd.s32 3041712726, %s40_s26 }
  0x19   :  { %v36_v9 = vadd.s32 %v34_v3, %v30_v2  ;;  %v369_v10 = vstv %s177_s1  ;;  %v371_v11 = vstv %s211_s3  ;;  %v35_v12 = vmul.u32 128, %v28_v4  ;;  %p303_p8 = scmp.ne.s32.totalorder %s263_s4, %s302_s5  ;;  %p307_p9 = scmp.lt.s32.totalorder %s263_s4, %s263_s4 }
  0x1a   :  { %p308_p10 = scmp.lt.s32.totalorder %s302_s5, %s302_s5 }
  0x1b   :  { %v43_v13 = vxor.u32 %v42_v5, %v36_v9  ;;  %v77_v14 = vxor.u32 %v76_v6, %v36_v9  ;;  %v111_v15 = vxor.u32 %v365_v7, %v36_v9  ;;  %v145_v16 = vxor.u32 %v367_v8, %v36_v9 }
  0x1c   :  { %v179_v17 = vxor.u32 %v369_v10, %v36_v9  ;;  %v213_v18 = vxor.u32 %v371_v11, %v36_v9  ;;  %v377_v19 = vadd.s32 %v35_v12, %v30_v2  ;;  %p309_p11 = por %p308_p10, %p307_p9 }
  0x1d   :  { %v45_v20 = vshrl.u32 %v43_v13, 16  ;;  %v79_v21 = vshrl.u32 %v77_v14, 16  ;;  %v113_v22 = vshrl.u32 %v111_v15, 16  ;;  %v147_v23 = vshrl.u32 %v145_v16, 16 }
  0x1e   :  { %v181_v24 = vshrl.u32 %v179_v17, 16  ;;  %v215_v25 = vshrl.u32 %v213_v18, 16  ;;  %v44_v26 = vxor.u32 %v42_v5, %v377_v19  ;;  %v78_v27 = vxor.u32 %v76_v6, %v377_v19  ;;  %p310_p12 = pnand %p309_p11, %p303_p8 }
  0x1f   :  { %v47_v28 = vxor.u32 %v45_v20, %v43_v13  ;;  %v81_v29 = vxor.u32 %v79_v21, %v77_v14  ;;  %v115_v30 = vxor.u32 %v113_v22, %v111_v15  ;;  %v149_v31 = vxor.u32 %v147_v23, %v145_v16 }
  0x20   :  { %v183_v32 = vxor.u32 %v181_v24, %v179_v17  ;;  %v217_v33 = vxor.u32 %v215_v25, %v213_v18  ;;  %v46_v34 = vshrl.u32 %v44_v26, 16  ;;  %v80_v35 = vshrl.u32 %v78_v27, 16 }
  0x21   :  { %v49_v36 = vmul.u32 2146121005, %v47_v28  ;;  %v83_v37 = vmul.u32 2146121005, %v81_v29  ;;  %v112_v12 = vxor.u32 %v365_v7, %v377_v19 }
  0x22   :  { %v117_v38 = vmul.u32 2146121005, %v115_v30  ;;  %v151_v39 = vmul.u32 2146121005, %v149_v31  ;;  %v48_v40 = vxor.u32 %v46_v34, %v44_v26  ;;  %v82_v41 = vxor.u32 %v80_v35, %v78_v27 }
  0x23   :  { %v51_v42 = vshrl.u32 %v49_v36, 15  ;;  %v85_v43 = vshrl.u32 %v83_v37, 15  ;;  %v185_v44 = vmul.u32 2146121005, %v183_v32  ;;  %v219_v45 = vmul.u32 2146121005, %v217_v33 }
  0x24   :  { %v119_v46 = vshrl.u32 %v117_v38, 15  ;;  %v153_v47 = vshrl.u32 %v151_v39, 15  ;;  %v50_v48 = vmul.u32 2146121005, %v48_v40  ;;  %v84_v49 = vmul.u32 2146121005, %v82_v41 }
  0x25   :  { %v53_v50 = vxor.u32 %v51_v42, %v49_v36  ;;  %v87_v51 = vxor.u32 %v85_v43, %v83_v37  ;;  %v187_v52 = vshrl.u32 %v185_v44, 15  ;;  %v221_v53 = vshrl.u32 %v219_v45, 15 }
  0x26   :  { %v121_v54 = vxor.u32 %v119_v46, %v117_v38  ;;  %v155_v55 = vxor.u32 %v153_v47, %v151_v39  ;;  %v52_v56 = vshrl.u32 %v50_v48, 15  ;;  %v86_v57 = vshrl.u32 %v84_v49, 15 }
  0x27   :  { %v55_v58 = vmul.u32 2221713035, %v53_v50  ;;  %v89_v59 = vmul.u32 2221713035, %v87_v51  ;;  %v189_v60 = vxor.u32 %v187_v52, %v185_v44  ;;  %v223_v61 = vxor.u32 %v221_v53, %v219_v45 }
  0x28   :  { %v123_v62 = vmul.u32 2221713035, %v121_v54  ;;  %v157_v63 = vmul.u32 2221713035, %v155_v55  ;;  %v54_v0 = vxor.u32 %v52_v56, %v50_v48  ;;  %v88_v1 = vxor.u32 %v86_v57, %v84_v49 }
  0x29   :  { %v57_v2 = vshrl.u32 %v55_v58, 16  ;;  %v91_v3 = vshrl.u32 %v89_v59, 16  ;;  %v191_v4 = vmul.u32 2221713035, %v189_v60  ;;  %v225_v5 = vmul.u32 2221713035, %v223_v61 }
  0x2a   :  { %v125_v6 = vshrl.u32 %v123_v62, 16  ;;  %v159_v9 = vshrl.u32 %v157_v63, 16  ;;  %v56_v15 = vmul.u32 2221713035, %v54_v0  ;;  %v90_v16 = vmul.u32 2221713035, %v88_v1 }
  0x2b   :  { %v59_v13 = vxor.u32 %v57_v2, %v55_v58  ;;  %v93_v14 = vxor.u32 %v91_v3, %v89_v59  ;;  %v193_v20 = vshrl.u32 %v191_v4, 16  ;;  %v227_v21 = vshrl.u32 %v225_v5, 16 }
  0x2c   :  { %v127_v17 = vxor.u32 %v125_v6, %v123_v62  ;;  %v161_v18 = vxor.u32 %v159_v9, %v157_v63  ;;  %v58_v43 = vshrl.u32 %v56_v15, 16  ;;  %v146_v44 = vxor.u32 %v367_v8, %v377_v19 }
  0x2d   :  { %v61_v22 = vand.u32 65535, %v59_v13  ;;  %v65_v23 = vshrl.u32 %v59_v13, 16  ;;  %v95_v24 = vand.u32 65535, %v93_v14  ;;  %v99_v25 = vshrl.u32 %v93_v14, 16 }
  0x2e   :  { %v129_v26 = vand.u32 65535, %v127_v17  ;;  %v133_v27 = vshrl.u32 %v127_v17, 16  ;;  %v163_v28 = vand.u32 65535, %v161_v18  ;;  %v167_v29 = vshrl.u32 %v161_v18, 16 }
  0x2f   :  { %v63_v30 = vcvt.s32.f32 %v61_v22  ;;  %v67_v31 = vcvt.s32.f32 %v65_v23  ;;  %v97_v32 = vcvt.s32.f32 %v95_v24  ;;  %v101_v7 = vcvt.s32.f32 %v99_v25 }
  0x30   :  { %v131_v33 = vcvt.s32.f32 %v129_v26  ;;  %v135_v34 = vcvt.s32.f32 %v133_v27  ;;  %v165_v35 = vcvt.s32.f32 %v163_v28  ;;  %v169_v36 = vcvt.s32.f32 %v167_v29 }
  0x31   :  { %v69_v37 = vadd.f32 %v67_v31, %v63_v30  ;;  %v103_v38 = vadd.f32 %v101_v7, %v97_v32  ;;  %v195_v39 = vxor.u32 %v193_v20, %v191_v4  ;;  %v229_v40 = vxor.u32 %v227_v21, %v225_v5 }
  0x32   :  { %v137_v41 = vadd.f32 %v135_v34, %v131_v33  ;;  %v171_v42 = vadd.f32 %v169_v36, %v165_v35  ;;  %v92_v52 = vshrl.u32 %v90_v16, 16  ;;  %v60_v59 = vxor.u32 %v58_v43, %v56_v15  ;;  %v251_v33 = vld [vmem:[#allocation4] sm:$0xff] }
  0x33   :  { %v71_v45 = vmul.f32 1.5258789e-05, %v69_v37  ;;  %v105_v46 = vmul.f32 1.5258789e-05, %v103_v38  ;;  %v197_v47 = vand.u32 65535, %v195_v39  ;;  %v201_v48 = vshrl.u32 %v195_v39, 16 }
  0x34   :  { %v139_v49 = vmul.f32 1.5258789e-05, %v137_v41  ;;  %v231_v50 = vand.u32 65535, %v229_v40  ;;  %v235_v51 = vshrl.u32 %v229_v40, 16  ;;  %v173_v54 = vmul.f32 1.5258789e-05, %v171_v42 }
  0x35   :  { %v107_v53 = vadd.f32 %v105_v46, %v71_v45  ;;  %v199_v55 = vcvt.s32.f32 %v197_v47  ;;  %v203_v56 = vcvt.s32.f32 %v201_v48  ;;  %v94_v63 = vxor.u32 %v92_v52, %v90_v16 }
  0x36   :  { %v233_v57 = vcvt.s32.f32 %v231_v50  ;;  %v237_v58 = vcvt.s32.f32 %v235_v51  ;;  %v114_v8 = vshrl.u32 %v112_v12, 16  ;;  %v148_v2 = vshrl.u32 %v146_v44, 16 }
  0x37   :  { %v141_v60 = vadd.f32 %v139_v49, %v107_v53  ;;  %v205_v61 = vadd.f32 %v203_v56, %v199_v55  ;;  %v62_v4 = vand.u32 65535, %v60_v59  ;;  %v180_v6 = vxor.u32 %v369_v10, %v377_v19 }
  0x38   :  { %v239_v62 = vadd.f32 %v237_v58, %v233_v57  ;;  %v116_v5 = vxor.u32 %v114_v8, %v112_v12  ;;  %v66_v13 = vshrl.u32 %v60_v59, 16  ;;  %v150_v14 = vxor.u32 %v148_v2, %v146_v44 }
  0x39   :  { %v175_v0 = vadd.f32 %v173_v54, %v141_v60  ;;  %v207_v1 = vmul.f32 1.5258789e-05, %v205_v61  ;;  %v214_v15 = vxor.u32 %v371_v11, %v377_v19  ;;  %v96_v17 = vand.u32 65535, %v94_v63 }
  0x3a   :  { %v241_v3 = vmul.f32 1.5258789e-05, %v239_v62  ;;  %v100_v18 = vshrl.u32 %v94_v63, 16  ;;  %v118_v20 = vmul.u32 2146121005, %v116_v5  ;;  %v182_v16 = vshrl.u32 %v180_v6, 16 }
  0x3b   :  { %v209_v9 = vadd.f32 %v207_v1, %v175_v0  ;;  %v152_v22 = vmul.u32 2146121005, %v150_v14  ;;  %v216_v23 = vshrl.u32 %v214_v15, 16  ;;  %v64_v24 = vcvt.s32.f32 %v62_v4 }
  0x3c   :  { %v120_v25 = vshrl.u32 %v118_v20, 15  ;;  %v184_v26 = vxor.u32 %v182_v16, %v180_v6  ;;  %v68_v27 = vcvt.s32.f32 %v66_v13  ;;  %v98_v29 = vcvt.s32.f32 %v96_v17 }
  0x3d   :  { %v243_v21 = vadd.f32 %v241_v3, %v209_v9  ;;  %v154_v28 = vshrl.u32 %v152_v22, 15  ;;  %v218_v10 = vxor.u32 %v216_v23, %v214_v15  ;;  %v102_v30 = vcvt.s32.f32 %v100_v18 }
  0x3e   :  { %v122_v31 = vxor.u32 %v120_v25, %v118_v20  ;;  %v186_v32 = vmul.u32 2146121005, %v184_v26  ;;  %v70_v37 = vadd.f32 %v68_v27, %v64_v24  ;;  %v252_v27 = vld [vmem:[#allocation4 + $0x8] sm:$0xff] }
  0x3f   :  { %v274_v12 = vadd.f32 -6.0, %v243_v21  ;;  %v156_v11 = vxor.u32 %v154_v28, %v152_v22  ;;  %v220_v19 = vmul.u32 2146121005, %v218_v10  ;;  %v104_v40 = vadd.f32 %v102_v30, %v98_v29 }
  0x40   :  { %v124_v34 = vmul.u32 2221713035, %v122_v31  ;;  %v188_v35 = vshrl.u32 %v186_v32, 15  ;;  %v72_v48 = vmul.f32 1.5258789e-05, %v70_v37 }
  0x41   :  { %v247_v7 = vmul.f32 0.5, %v274_v12  ;;  %v158_v38 = vmul.u32 2221713035, %v156_v11  ;;  %v222_v39 = vshrl.u32 %v220_v19, 15  ;;  %v106_v51 = vmul.f32 1.5258789e-05, %v104_v40 }
  0x42   :  { %v126_v41 = vshrl.u32 %v124_v34, 16  ;;  %v190_v42 = vxor.u32 %v188_v35, %v186_v32 }
  0x43   :  { %v249_v36 = vadd.f32 1.0, %v247_v7  ;;  %v160_v44 = vshrl.u32 %v158_v38, 16  ;;  %v224_v45 = vxor.u32 %v222_v39, %v220_v19  ;;  %v108_v8 = vadd.f32 %v106_v51, %v72_v48 }
  0x44   :  { %v128_v46 = vxor.u32 %v126_v41, %v124_v34  ;;  %v192_v47 = vmul.u32 2221713035, %v190_v42 }
  0x45   :  { %v253_v43 = vmul.f32 %v251_v33, %v249_v36  ;;  %v162_v49 = vxor.u32 %v160_v44, %v158_v38  ;;  %v226_v50 = vmul.u32 2221713035, %v224_v45 }
  0x46   :  { %v130_v52 = vand.u32 65535, %v128_v46  ;;  %v134_v53 = vshrl.u32 %v128_v46, 16  ;;  %v194_v54 = vshrl.u32 %v192_v47, 16 }
  0x47   :  { %255 = vst [vmem:[#allocation7] sm:$0xff] %v253_v43  ;;  %v164_v55 = vand.u32 65535, %v162_v49  ;;  %v168_v56 = vshrl.u32 %v162_v49, 16  ;;  %v228_v57 = vshrl.u32 %v226_v50, 16 }
  0x48   :  { %v132_v58 = vcvt.s32.f32 %v130_v52  ;;  %v136_v59 = vcvt.s32.f32 %v134_v53  ;;  %v196_v60 = vxor.u32 %v194_v54, %v192_v47 }
  0x49   :  { %v166_v61 = vcvt.s32.f32 %v164_v55  ;;  %v170_v62 = vcvt.s32.f32 %v168_v56  ;;  %v230_v63 = vxor.u32 %v228_v57, %v226_v50 }
  0x4a   :  { %v138_v0 = vadd.f32 %v136_v59, %v132_v58  ;;  %v198_v1 = vand.u32 65535, %v196_v60  ;;  %v202_v2 = vshrl.u32 %v196_v60, 16 }
  0x4b   :  { %v172_v3 = vadd.f32 %v170_v62, %v166_v61  ;;  %v232_v4 = vand.u32 65535, %v230_v63  ;;  %v236_v5 = vshrl.u32 %v230_v63, 16 }
  0x4c   :  { %v140_v6 = vmul.f32 1.5258789e-05, %v138_v0  ;;  %v200_v9 = vcvt.s32.f32 %v198_v1  ;;  %v204_v13 = vcvt.s32.f32 %v202_v2 }
  0x4d   :  { %v174_v14 = vmul.f32 1.5258789e-05, %v172_v3  ;;  %v234_v15 = vcvt.s32.f32 %v232_v4  ;;  %v238_v17 = vcvt.s32.f32 %v236_v5 }
  0x4e   :  { %v142_v18 = vadd.f32 %v140_v6, %v108_v8  ;;  %v206_v20 = vadd.f32 %v204_v13, %v200_v9 }
  0x4f   :  { %v240_v16 = vadd.f32 %v238_v17, %v234_v15 }
  0x50   :  { %v176_v21 = vadd.f32 %v174_v14, %v142_v18  ;;  %v208_v22 = vmul.f32 1.5258789e-05, %v206_v20 }
  0x51   :  { %v242_v23 = vmul.f32 1.5258789e-05, %v240_v16 }
  0x52   :  { %v210_v24 = vadd.f32 %v208_v22, %v176_v21 }
  0x54   :  { %v244_v25 = vadd.f32 %v242_v23, %v210_v24 }
  0x56   :  { %v275_v26 = vadd.f32 -6.0, %v244_v25 }
  0x58   :  { %v248_v12 = vmul.f32 0.5, %v275_v26 }
  0x5a   :  { %v250_v28 = vadd.f32 1.0, %v248_v12 }
  0x5c   :  { %v254_v10 = vmul.f32 %v252_v27, %v250_v28 }
  0x5e   :  { %256 = vst [vmem:[#allocation7 + $0x8] sm:$0xff] %v254_v10 }
  0x5f   :  { %313 = shalt.err (!%p310_p12)
}
  0x60   :  { %s314_s8 = scalar_lea.hbm %s406_s2, 256 }
  0x61   :  { %p315_p13 = scmp.ne.s32.totalorder %s406_s2, %s314_s8  ;;  %p318_p0 = scmp.lt.u32.totalorder %s314_s8, %s406_s2 }
  0x63   :  { %p320_p1 = pnand %p318_p0, %p315_p13 }
  0x65   :  { %323 = shalt.err (!%p320_p1)
}
  0x66   :  { %268 = dma.vmem_to_hbm [thread:$0]  %s263_s4, 256, %s406_s2, [#allocation6], %s329_s19, %s329_s19, %s330_s20  }
  0x67   :  { %326 = dma.done.wait [#allocation6], 256  }
  0x68   :  { %327 = vsyncadd [#allocation6], 4294967040 }
  0x69   :  { %272 = vsyncpa [#allocation5], 1 }
  0x6a   :  { %273 = vsyncpa [#allocation6], 1 }

</bundles_post_ra>
